<compile_context>
chip_gen: v5e
topology: v5e:2x2
jax: 0.10.0
libtpu: 0.0.40
codegen_flags: <defaults>
</compile_context>

<pallas_src>
import functools
import math

import jax
import jax.numpy as jnp
from jax.experimental import pallas as pl
from jax.experimental.pallas import tpu as pltpu  # noqa: F401  (TPU backend)


def _attention_head_kernel(x_ref, wqkv_ref, bqkv_ref, out_ref, probs_ref, *,
                           batch, seq, head_dim, compute_dtype):
    """x_ref: (B*S, H); wqkv_ref: (H, 3D); bqkv_ref: (1, 3D);
       out_ref: (B*S, D); probs_ref: (B*S, S)."""
    B, S, D = batch, seq, head_dim
    scale = 1.0 / math.sqrt(D)

    # ---- fused projection: one MXU matmul yields q|k|v for ALL B*S rows -----
    qkv = jnp.dot(x_ref[...], wqkv_ref[...],
                  preferred_element_type=jnp.float32) + bqkv_ref[...]  # (B*S, 3D) f32

    # Cast once for the attention matmuls (bf16 MXU operands; f32 accumulate).
    qkv = qkv.astype(compute_dtype)
    # Sublane-aligned reshape (S rows per batch) -> layout-free.
    qkv3 = qkv.reshape(B, S, 3 * D)

    # ---- hoisted lane slices: exactly 3, independent of B --------------------
    q = qkv3[:, :, 0:D]          # (B, S, D)
    k = qkv3[:, :, D:2 * D]      # (B, S, D)
    v = qkv3[:, :, 2 * D:3 * D]  # (B, S, D)

    # ---- batched attention (no per-batch unrolled loop) ----------------------
    # scores = q @ k^T, contracting the LAST dims (no transpose materialized).
    scores = jnp.einsum("bqd,bkd->bqk", q, k,
                        preferred_element_type=jnp.float32) * scale   # (B, S, S) f32

    # Numerically-stable f32 softmax with EXACT normalization.
    m = jnp.max(scores, axis=-1, keepdims=True)
    e = jnp.exp(scores - m)
    denom = jnp.sum(e, axis=-1, keepdims=True)
    probs = e / denom                                                 # (B, S, S) f32

    out = jnp.einsum("bqk,bkd->bqd", probs.astype(compute_dtype), v,
                     preferred_element_type=jnp.float32)              # (B, S, D) f32

    # Single 2-D slab stores (leading-dim collapse is layout-free).
    out_ref[...] = out.reshape(B * S, D).astype(out_ref.dtype)
    probs_ref[...] = probs.reshape(B * S, S).astype(probs_ref.dtype)


def attention_head(x, wq, bq, wk, bk, wv, bv, *, matmul_in_bf16=True):
    """x: (B, S, H); wq/wk/wv: (H, D); bq/bk/bv: (1, D). Returns (out, probs).

    Weights are stored pre-transposed (H, D) so q = x @ Wq + bq matches
    PyTorch's nn.Linear (y = x @ W.T + b).
    """
    B, S, H = x.shape
    D = wq.shape[1]
    compute_dtype = jnp.bfloat16 if matmul_in_bf16 else jnp.float32
    itemsize = jnp.dtype(compute_dtype).itemsize
    out_itemsize = jnp.dtype(x.dtype).itemsize

    # Fuse the three projections into a single (H, 3D) weight / (1, 3D) bias.
    wqkv = jnp.concatenate([wq, wk, wv], axis=1).astype(compute_dtype)
    bqkv = jnp.concatenate([bq, bk, bv], axis=1).astype(jnp.float32)
    # Flatten batch+seq so the projection is one dense (B*S, H) matmul
    # (reshape is free in XLA outside the kernel).
    x2d = x.reshape(B * S, H).astype(compute_dtype)

    # Advisory cost estimate so XLA can schedule around the custom call.
    flops = 2 * (B * S) * H * (3 * D) + 2 * B * S * S * D + 2 * B * S * S * D
    bytes_accessed = (x2d.size * itemsize + wqkv.size * itemsize + bqkv.size * 4
                      + B * S * D * out_itemsize + B * S * S * out_itemsize)
    cost = pl.CostEstimate(flops=flops, transcendentals=B * S * S,
                           bytes_accessed=bytes_accessed)

    kernel = functools.partial(_attention_head_kernel, batch=B, seq=S,
                               head_dim=D, compute_dtype=compute_dtype)

    # No grid: everything fits in VMEM at these shapes; all operands/outputs
    # are full blocks resident in VMEM for a single kernel invocation.
    out2d, probs2d = pl.pallas_call(
        kernel,
        out_shape=(
            jax.ShapeDtypeStruct((B * S, D), x.dtype),
            jax.ShapeDtypeStruct((B * S, S), x.dtype),
        ),
        cost_estimate=cost,
    )(x2d, wqkv, bqkv)
    return out2d.reshape(B, S, D), probs2d.reshape(B, S, S)


def _reference(x, wq, bq, wk, bk, wv, bv):
    q = jnp.einsum("bsh,hd->bsd", x, wq) + bq[None]
    k = jnp.einsum("bsh,hd->bsd", x, wk) + bk[None]
    v = jnp.einsum("bsh,hd->bsd", x, wv) + bv[None]
    scores = jnp.einsum("bqd,bkd->bqk", q, k) / math.sqrt(wq.shape[1])
    probs = jax.nn.softmax(scores, axis=-1)
    out = jnp.einsum("bqk,bkd->bqd", probs, v)
    return out, probs


if __name__ == "__main__":
    B, S, H, D = 2, 8, 32, 16   # batch, seq, hidden_size, attention_head_size

    key = jax.random.PRNGKey(0)
    kx, kq, kbq, kk, kbk, kv, kbv = jax.random.split(key, 7)

    x = jax.random.normal(kx, (B, S, H), dtype=jnp.float32)
    # nn.Linear-style init (uniform in +-1/sqrt(H)), weights stored as (H, D).
    lim = 1.0 / math.sqrt(H)
    wq = jax.random.uniform(kq, (H, D), jnp.float32, -lim, lim)
    wk = jax.random.uniform(kk, (H, D), jnp.float32, -lim, lim)
    wv = jax.random.uniform(kv, (H, D), jnp.float32, -lim, lim)
    bq = jax.random.uniform(kbq, (1, D), jnp.float32, -lim, lim)
    bk = jax.random.uniform(kbk, (1, D), jnp.float32, -lim, lim)
    bv = jax.random.uniform(kbv, (1, D), jnp.float32, -lim, lim)

    ref_out, ref_probs = _reference(x, wq, bq[0], wk, bk[0], wv, bv[0])

    # Exact f32 path: exact-reciprocal softmax restores tight tolerance.
    out32, probs32 = attention_head(x, wq, bq, wk, bk, wv, bv,
                                    matmul_in_bf16=False)
    out32 = jax.block_until_ready(out32)
    probs32 = jax.block_until_ready(probs32)
    assert jnp.allclose(out32, ref_out, atol=1e-5, rtol=1e-5)
    assert jnp.allclose(probs32, ref_probs, atol=1e-5, rtol=1e-5)

    # Performance path: bf16 MXU operands, f32 accumulation + f32 softmax.
    out, probs = attention_head(x, wq, bq, wk, bk, wv, bv, matmul_in_bf16=True)
    out = jax.block_until_ready(out)
    probs = jax.block_until_ready(probs)
    assert jnp.allclose(out, ref_out, atol=2e-2, rtol=2e-2)
    assert jnp.allclose(probs, ref_probs, atol=2e-2, rtol=2e-2)

    print("KERNEL_OK")
</pallas_src>

<mosaic_0001>
module attributes {stable_mosaic.version = 11 : i64} {
  func.func @_attention_head_kernel(%arg0: memref<16x32xf32, #tpu.memory_space<vmem>>, %arg1: memref<32x48xf32, #tpu.memory_space<vmem>>, %arg2: memref<1x48xf32, #tpu.memory_space<vmem>>, %arg3: memref<16x16xf32, #tpu.memory_space<vmem>>, %arg4: memref<16x8xf32, #tpu.memory_space<vmem>>) attributes {dimension_semantics = [], scalar_prefetch = 0 : i64, scratch_operands = 0 : i64, tpu.core_type = #tpu.core_type<tc>} {
    %c0 = arith.constant 0 : index
    %c0_0 = arith.constant 0 : index
    %0 = vector.load %arg0[%c0, %c0_0] : memref<16x32xf32, #tpu.memory_space<vmem>>, vector<16x32xf32>
    %c0_1 = arith.constant 0 : index
    %c0_2 = arith.constant 0 : index
    %1 = vector.load %arg1[%c0_1, %c0_2] : memref<32x48xf32, #tpu.memory_space<vmem>>, vector<32x48xf32>
    %cst = arith.constant dense<0.000000e+00> : vector<16x48xf32>
    %2 = tpu.matmul %0, %1, %cst {dimension_numbers = #tpu.dot_dimension_numbers<[1], [0], [0], [1], [0, 0, 1, 1], [], []>} : vector<16x32xf32>, vector<32x48xf32>, vector<16x48xf32> -> vector<16x48xf32>
    %c0_3 = arith.constant 0 : index
    %c0_4 = arith.constant 0 : index
    %3 = vector.load %arg2[%c0_3, %c0_4] : memref<1x48xf32, #tpu.memory_space<vmem>>, vector<1x48xf32>
    %4 = vector.broadcast %3 : vector<1x48xf32> to vector<16x48xf32>
    %5 = arith.addf %2, %4 : vector<16x48xf32>
    %6 = vector.shape_cast %5 : vector<16x48xf32> to vector<2x8x48xf32>
    %7 = vector.extract_strided_slice %6 {offsets = [0, 0, 0], sizes = [2, 8, 16], strides = [1, 1, 1]} : vector<2x8x48xf32> to vector<2x8x16xf32>
    %8 = vector.extract_strided_slice %6 {offsets = [0, 0, 16], sizes = [2, 8, 16], strides = [1, 1, 1]} : vector<2x8x48xf32> to vector<2x8x16xf32>
    %9 = vector.extract_strided_slice %6 {offsets = [0, 0, 32], sizes = [2, 8, 16], strides = [1, 1, 1]} : vector<2x8x48xf32> to vector<2x8x16xf32>
    "tpu.trace_start"() <{level = 10 : i32, message = "bqd,bkd->bqk"}> : () -> ()
    %cst_5 = arith.constant dense<0.000000e+00> : vector<2x8x8xf32>
    %10 = tpu.matmul %7, %8, %cst_5 {dimension_numbers = #tpu.dot_dimension_numbers<[2], [2], [1], [1], [0, 0, 0, 1, 1, 1], [0], [0]>} : vector<2x8x16xf32>, vector<2x8x16xf32>, vector<2x8x8xf32> -> vector<2x8x8xf32>
    "tpu.trace_stop"() : () -> ()
    %cst_6 = arith.constant 2.500000e-01 : f32
    %11 = vector.broadcast %cst_6 : f32 to vector<2x8x8xf32>
    %12 = arith.mulf %10, %11 : vector<2x8x8xf32>
    %cst_7 = arith.constant dense<0xFF800000> : vector<2x8xf32>
    %13 = vector.multi_reduction <maximumf>, %12, %cst_7 [2] : vector<2x8x8xf32> to vector<2x8xf32>
    %14 = vector.shape_cast %13 : vector<2x8xf32> to vector<2x8x1xf32>
    %15 = vector.broadcast %14 : vector<2x8x1xf32> to vector<2x8x8xf32>
    %16 = arith.subf %12, %15 : vector<2x8x8xf32>
    %17 = math.exp %16 : vector<2x8x8xf32>
    %cst_8 = arith.constant dense<0.000000e+00> : vector<2x8xf32>
    %18 = vector.multi_reduction <add>, %17, %cst_8 [2] : vector<2x8x8xf32> to vector<2x8xf32>
    %19 = vector.shape_cast %18 : vector<2x8xf32> to vector<2x8x1xf32>
    %20 = vector.broadcast %19 : vector<2x8x1xf32> to vector<2x8x8xf32>
    %21 = arith.divf %17, %20 : vector<2x8x8xf32>
    "tpu.trace_start"() <{level = 10 : i32, message = "bqk,bkd->bqd"}> : () -> ()
    %cst_9 = arith.constant dense<0.000000e+00> : vector<2x8x16xf32>
    %22 = tpu.matmul %21, %9, %cst_9 {dimension_numbers = #tpu.dot_dimension_numbers<[2], [1], [1], [2], [0, 0, 0, 1, 1, 2], [0], [0]>} : vector<2x8x8xf32>, vector<2x8x16xf32>, vector<2x8x16xf32> -> vector<2x8x16xf32>
    "tpu.trace_stop"() : () -> ()
    %23 = vector.shape_cast %22 : vector<2x8x16xf32> to vector<16x16xf32>
    %c0_10 = arith.constant 0 : index
    %c0_11 = arith.constant 0 : index
    %24 = vector.load %arg3[%c0_10, %c0_11] : memref<16x16xf32, #tpu.memory_space<vmem>>, vector<16x16xf32>
    tpu.vector_store %arg3[%c0_10, %c0_11], %23 {strides = array<i32>} : memref<16x16xf32, #tpu.memory_space<vmem>>, vector<16x16xf32>,
    %25 = vector.shape_cast %21 : vector<2x8x8xf32> to vector<16x8xf32>
    %c0_12 = arith.constant 0 : index
    %c0_13 = arith.constant 0 : index
    %26 = vector.load %arg4[%c0_12, %c0_13] : memref<16x8xf32, #tpu.memory_space<vmem>>, vector<16x8xf32>
    tpu.vector_store %arg4[%c0_12, %c0_13], %25 {strides = array<i32>} : memref<16x8xf32, #tpu.memory_space<vmem>>, vector<16x8xf32>,
    return
  }
}

</mosaic_0001>

<bundles_post_ra>
// kernel: tpu_custom_call.1
= control target key start
LH: loop header
LB: loop body
LE: loop exit
PB: predicated region body
PF: predicated region fallthrough
CT: control target
= control target key end

     0   :  { %10 = vsyncpa [#allocation3], 0  ;;  %s450_s0 = inlined_call_operand.hbm [shape: f32[16,32], index: 0, kind: input, shape index: {}]   ;;  %s451_s1 = inlined_call_operand.hbm [shape: f32[32,48], index: 1, kind: input, shape index: {}]   ;;  %s452_s2 = inlined_call_operand.vmem [shape: f32[1,48], index: 2, kind: input, shape index: {}]   ;;  %s453_s3 = inlined_call_operand.hbm [shape: f32[16,16], index: 3, kind: output, shape index: {0}]   ;;  %s454_s4 = inlined_call_operand.vmem [shape: f32[16,8], index: 4, kind: output, shape index: {1}]  }
   0x1   :  { %11 = vsyncpa [#allocation6], 0 }
   0x2   :  { %12 = vsyncpa [#allocation4], 0  ;;  %s17_s17 = sshll.u32 %s450_s0, 4  ;;  %s377_s18 = smov [#allocation2]   ;;  %s18_s17 = int_to_ptr.hbm [resolvable:$true] %s17_s17 }
   0x3   :  { %s19_s19 = sshll.u32 %s377_s18, 4  ;;  %s30_s22 = sshll.u32 %s451_s1, 4  ;;  %s20_s19 = int_to_ptr.vmem [resolvable:$true] %s19_s19  ;;  %s31_s22 = int_to_ptr.hbm [resolvable:$true] %s30_s22 }
   0x4   :  { %s378_s23 = smov 128   ;;  %s379_s24 = smov 8  }
   0x5   :  { %25 = dma.hbm_to_vmem [thread:$0]  %s18_s17, 256, %s20_s19, [#allocation3], %s378_s23, %s378_s23, %s379_s24  }
   0x6   :  { %s380_s25 = smov [#allocation5]  }
   0x7   :  { %s32_s26 = sshll.u32 %s380_s25, 4  ;;  %s33_s26 = int_to_ptr.vmem [resolvable:$true] %s32_s26 }
   0x8   :  { %38 = dma.hbm_to_vmem [thread:$0]  %s31_s22, 512, %s33_s26, [#allocation6], %s378_s23, %s378_s23, %s379_s24  }
   0x9   :  { %371 = dma.done.wait [#allocation3], 256  }
   0xa   :  { %372 = vsyncadd [#allocation3], 4294967040 }
   0xb   :  { %373 = dma.done.wait [#allocation6], 512  }
   0xc   :  { %374 = vsyncadd [#allocation6], 4294966784  ;;  %v54_v0 = vld [vmem:[#allocation5 + $0x18] sm:$0xff]  ;;  %v53_v1 = vld [vmem:[#allocation5 + $0x10] sm:$0xff]  ;;  %vm59_vm0 = vcmask 261120   ;;  %s381_s27 = smov 112  }
   0xd   :  { %78 = vmatpush.msra.mxu0 %v54_v0  ;;  %v52_v2 = vld [vmem:[#allocation5 + $0x8] sm:$0xff]  ;;  %v51_v3 = vld [vmem:[#allocation5] sm:$0xff]  ;;  %v49_v4 = vld [vmem:[#allocation2] sm:$0xff]  ;;  %s382_s28 = smov 96   ;;  %vm92_vm1 = vcmask 130048   ;;  %vm146_vm2 = vcmask 64512  }
   0xe   :  { %v50_v5 = vld [vmem:[#allocation2 + $0x8] sm:$0xff]  ;;  %v290_v6 = vld [vmem:[%s452_s2] ss:$0 sm:$0xff]  ;;  %s383_s6 = smov [#allocation7]   ;;  %s257_s10 = sshll.u32 %s453_s3, 4  ;;  %s258_s10 = int_to_ptr.hbm [resolvable:$true] %s257_s10 }
   0xf   :  { %79 = vmatpush.msra.mxu0 %v53_v1  ;;  %s255_s7 = sshll.u32 %s383_s6, 4  ;;  %s256_s7 = int_to_ptr.vmem [resolvable:$true] %s255_s7 }
  0x11   :  { %80 = vmatpush.msra.mxu0 %v52_v2 }
  0x13   :  { %81 = vmatpush.msra.mxu0 %v51_v3 }
  0x14   :  { %275 = vmatmul.msk.f32.vlgmr.msra.gmra.mxu0 %vm59_vm0, %v49_v4 }
  0x1c   :  { %276 = vmatmul.msk.f32.gmra.mxu0 %vm59_vm0, %v50_v5 }
  0x91   :  { %v83_v7 = vpop.f32.mrf.mxu0 }
  0x92   :  { %v84_v8 = vadd.f32 %v290_v6, %v83_v7 }
  0x94   :  { %90 = vrot.lane.b32.xlu0 %v84_v8, %s381_s27 }
  0x99   :  { %v86_v9 = vpop.f32.mrf.mxu0 }
  0x9a   :  { %v87_v10 = vadd.f32 %v290_v6, %v86_v9 }
  0x9c   :  { %118 = vrot.lane.b32.xlu0 %v87_v10, %s381_s27 }
  0xa4   :  { %195 = vrot.lane.b32.xlu0 %v84_v8, %s382_s28 }
 0x106   :  { %v91_v11 = vpop.permute.xlu0 %90 }
 0x107   :  { %277 = vmatpush.xpose.msk.msra.mxu1 %vm92_vm1, %v91_v11 }
 0x10a   :  { %278 = vmatmul.msk.f32.vlgmr.msra.gmra.mxu1 %vm92_vm1, %v84_v8 }
 0x10e   :  { %v119_v12 = vpop.permute.xlu0 %118 }
 0x10f   :  { %279 = vmatpush.xpose.msk.msra.mxu2 %vm92_vm1, %v119_v12 }
 0x112   :  { %280 = vmatmul.msk.f32.vlgmr.msra.gmra.mxu2 %vm92_vm1, %v87_v10 }
 0x116   :  { %v196_v13 = vpop.permute.xlu0 %195 }
 0x117   :  { %216 = vmatpush.msra.mxu3 %v196_v13 }
 0x187   :  { %v114_v14 = vpop.f32.mrf.mxu1 }
 0x188   :  { %v144_v15 = vmul.f32 0.25, %v114_v14 }
 0x18a   :  { %v147_v16 = vsel %vm146_vm2, %v144_v15, -inf }
 0x18b   :  { %148 = vmax.xlane.f32.xlu1 %v147_v16 }
 0x195   :  { %v141_v17 = vpop.f32.mrf.mxu2 }
 0x196   :  { %v145_v18 = vmul.f32 0.25, %v141_v17 }
 0x198   :  { %v150_v19 = vsel %vm146_vm2, %v145_v18, -inf }
 0x199   :  { %151 = vmax.xlane.f32.xlu1 %v150_v19 }
 0x1b2   :  { %221 = vrot.lane.b32.xlu1 %v87_v10, %s382_s28 }
 0x1fe   :  { %v149_v20 = vpop.xlane.xlu1 %148 }
 0x1ff   :  { %v153_v21 = vsub.f32 %v144_v15, %v149_v20 }
 0x201   :  { %v155_v22 = vmul.f32 1.442695, %v153_v21 }
 0x203   :  { %291 = vpow2.f32 %v155_v22 }
 0x209   :  { %v292_v23 = vpop.eup %291 }
 0x20a   :  { %v159_v24 = vsel %vm146_vm2, %v292_v23, 0.0 }
 0x20b   :  { %160 = vadd.xlane.f32.xlu2 %v159_v24 }
 0x20c   :  { %v152_v25 = vpop.xlane.xlu1 %151 }
 0x20d   :  { %v154_v26 = vsub.f32 %v145_v18, %v152_v25 }
 0x20f   :  { %v157_v27 = vmul.f32 1.442695, %v154_v26 }
 0x211   :  { %293 = vpow2.f32 %v157_v27 }
 0x217   :  { %v294_v28 = vpop.eup %293 }
 0x218   :  { %v162_v29 = vsel %vm146_vm2, %v294_v28, 0.0 }
 0x219   :  { %163 = vadd.xlane.f32.xlu2 %v162_v29 }
 0x224   :  { %v222_v30 = vpop.permute.xlu1 %221 }
 0x225   :  { %242 = vmatpush.msrb.mxu3 %v222_v30 }
 0x27e   :  { %v161_v31 = vpop.xlane.xlu2 %160 }
 0x27f   :  { %295 = vrcp.f32 %v161_v31  ;;  %v176_v35 = vand.u32 2147483648, %v161_v31  ;;  %v174_v37 = vand.u32 2147483647, %v161_v31  ;;  %vm170_vm4 = vweird.f32 %v161_v31 }
 0x281   :  { %v177_v40 = vor.u32 1.1754944e-38, %v176_v35  ;;  %vm175_vm6 = vcmp.eq.f32.partialorder %v174_v37, 8.507059e+37 }
 0x285   :  { %v296_v32 = vpop.eup %295 }
 0x286   :  { %v166_v33 = vmul.f32 %v296_v32, %v161_v31  ;;  %vm171_vm3 = vweird.f32 %v296_v32 }
 0x287   :  { %vm172_vm5 = vmor %vm170_vm4, %vm171_vm3 }
 0x288   :  { %v167_v34 = vsub.f32 1.0, %v166_v33 }
 0x28a   :  { %v168_v36 = vmul.f32 %v296_v32, %v167_v34 }
 0x28c   :  { %v164_v38 = vpop.xlane.xlu2 %163  ;;  %v169_v39 = vadd.f32 %v296_v32, %v168_v36 }
 0x28d   :  { %297 = vrcp.f32 %v164_v38  ;;  %v191_v47 = vand.u32 2147483648, %v164_v38  ;;  %v189_v49 = vand.u32 2147483647, %v164_v38  ;;  %vm185_vm8 = vweird.f32 %v164_v38 }
 0x28e   :  { %v173_v41 = vsel %vm172_vm5, %v296_v32, %v169_v39 }
 0x28f   :  { %v178_v42 = vsel %vm175_vm6, %v177_v40, %v173_v41  ;;  %v192_v51 = vor.u32 1.1754944e-38, %v191_v47  ;;  %vm190_vm10 = vcmp.eq.f32.partialorder %v189_v49, 8.507059e+37 }
 0x290   :  { %v179_v43 = vmul.f32 %v292_v23, %v178_v42 }
 0x292   :  { %281 = vmatmul.msk.f32.vlgmr.msra.gmra.mxu3 %vm146_vm2, %v179_v43  ;;  %249 = vst.msk [vmem:[%s454_s4] sm:$0xff] %vm146_vm2, %v179_v43 }
 0x293   :  { %v298_v44 = vpop.eup %297 }
 0x294   :  { %v181_v45 = vmul.f32 %v298_v44, %v164_v38  ;;  %vm186_vm7 = vweird.f32 %v298_v44 }
 0x295   :  { %vm187_vm9 = vmor %vm185_vm8, %vm186_vm7 }
 0x296   :  { %v182_v46 = vsub.f32 1.0, %v181_v45 }
 0x298   :  { %v183_v48 = vmul.f32 %v298_v44, %v182_v46 }
 0x29a   :  { %v184_v50 = vadd.f32 %v298_v44, %v183_v48 }
 0x29c   :  { %v188_v52 = vsel %vm187_vm9, %v298_v44, %v184_v50 }
 0x29d   :  { %v193_v53 = vsel %vm190_vm10, %v192_v51, %v188_v52 }
 0x29e   :  { %v194_v54 = vmul.f32 %v294_v28, %v193_v53 }
 0x2a0   :  { %282 = vmatmul.msk.f32.vlgmr.msrb.gmra.mxu3 %vm146_vm2, %v194_v54  ;;  %250 = vst.msk [vmem:[%s454_s4 + $0x8] sm:$0xff] %vm146_vm2, %v194_v54 }
 0x315   :  { %v218_v55 = vpop.f32.mrf.mxu3 }
 0x316   :  { %247 = vst.msk [vmem:[#allocation7] sm:$0xff] %vm92_vm1, %v218_v55 }
 0x323   :  { %v244_v56 = vpop.f32.mrf.mxu3 }
 0x324   :  { %248 = vst.msk [vmem:[#allocation7 + $0x8] sm:$0xff] %vm92_vm1, %v244_v56 }
 0x325   :  { %263 = dma.vmem_to_hbm [thread:$0]  %s256_s7, 256, %s258_s10, [#allocation4], %s378_s23, %s378_s23, %s379_s24  }
 0x326   :  { %375 = dma.done.wait [#allocation4], 256  }
 0x327   :  { %376 = vsyncadd [#allocation4], 4294967040 }
 0x328   :  { %272 = vsyncpa [#allocation3], 1 }
 0x329   :  { %273 = vsyncpa [#allocation6], 1 }
 0x32a   :  { %274 = vsyncpa [#allocation4], 1 }

</bundles_post_ra>
